<compile_context>
chip_gen: v6e
topology: v6e:2x2x1
jax: 0.10.0
libtpu: 0.0.40
codegen_flags: <defaults>
</compile_context>

<pallas_src>
import functools

import jax
import jax.numpy as jnp
import numpy as np
from jax.experimental import pallas as pl
from jax.experimental.pallas import tpu as pltpu


def _ce_partial_kernel(logits_ref, meta_ref, out_ref, m_sc, d_sc, g_sc, *,
                       n_rows, vocab, tile_n, tile_v, mask_cols):
    """One (row-tile, vocab-tile) step of streamed log-sum-exp cross entropy."""
    i = pl.program_id(0)
    k = pl.program_id(1)
    nk = pl.num_programs(1)

    @pl.when(k == 0)
    def _():
        m_sc[...] = jnp.full_like(m_sc, -jnp.inf)
        d_sc[...] = jnp.zeros_like(d_sc)
        g_sc[...] = jnp.zeros_like(g_sc)

    # f32 math on the VMEM tile (v5e has no bf16 VPU/EUP); the HBM stream
    # keeps the original dtype.
    lg = logits_ref[...].astype(jnp.float32)                       # (TN, TV)
    lbl = meta_ref[:, 0:1]                                         # (TN, 1) i32

    # (1, TV) column ids for this vocab tile; sublane-broadcast is cheap.
    col = k * tile_v + jax.lax.broadcasted_iota(jnp.int32, (1, tile_v), 1)
    if mask_cols:  # ragged last vocab tile: neutralize out-of-range columns
        lg = jnp.where(col < vocab, lg, -jnp.inf)

    # ---- online logsumexp update ----
    m_old = m_sc[...]
    m_new = jnp.maximum(m_old, jnp.max(lg, axis=-1, keepdims=True))
    shifted = lg - m_new                                           # reused below
    d_sc[...] = (d_sc[...] * jnp.exp(m_old - m_new)
                 + jnp.sum(jnp.exp(shifted), axis=-1, keepdims=True))
    # Label logit (raw value): the label column lands in exactly one vocab tile.
    g_sc[...] += jnp.sum(jnp.where(col == lbl, lg, 0.0), axis=-1, keepdims=True)
    m_sc[...] = m_new

    @pl.when(k == nk - 1)
    def _():
        # Row-validity mask for the (possibly ragged) last row tile.
        row = i * tile_n + jax.lax.broadcasted_iota(jnp.int32, (tile_n, 1), 0)
        row_ok = row < n_rows
        loss = m_sc[...] + jnp.log(d_sc[...]) - g_sc[...]          # (TN, 1)
        # select (not multiply) so NaN/Inf from garbage rows cannot leak in
        loss = jnp.where(row_ok, loss, 0.0)
        change = jnp.where(row_ok, meta_ref[:, 1:2].astype(jnp.float32), 0.0)

        s_change = jnp.sum(loss * change)
        s_all = jnp.sum(loss)
        c_change = jnp.sum(change)
        # Remain side derived in the wrapper:
        #   s_remain = s_all - s_change ;  c_remain = N - c_change

        lane = jax.lax.broadcasted_iota(jnp.int32, (1, 128), 1)
        out_ref[...] = (jnp.where(lane == 0, s_change, 0.0)
                        + jnp.where(lane == 1, s_all, 0.0)
                        + jnp.where(lane == 2, c_change, 0.0))


@functools.lru_cache(maxsize=None)
def _vmem_limit_bytes():
    """Generation-aware scoped VMEM limit (~60% of physical, clamped)."""
    cap = 64 * 1024 * 1024  # conservative fallback (v7x per-TC physical)
    try:
        info = pltpu.get_tpu_info()
        cap = int(getattr(info, "vmem_capacity_bytes", 0) or cap)
    except Exception:
        pass
    lim = cap * 6 // 10                       # 128 MiB -> ~77 MiB, 64 MiB -> ~38 MiB
    return int(min(max(lim, 16 * 1024 * 1024), 96 * 1024 * 1024))


def _pick_tiles(n_rows, vocab, itemsize, vmem_limit):
    """Pick (tile_n, tile_v) from total VMEM footprint.

    Per (row, vocab-col) element: 2x double-buffered input tile in its HBM
    dtype + ~4x f32 intermediates (f32 cast, shifted, exp, gather select).
    ~40% of the scoped limit is kept as headroom for scratch / compiler temps.
    """
    per_elem = 2 * itemsize + 16
    budget = max(int(0.6 * vmem_limit) // per_elem, 8 * 128)

    tn_full = budget // max(vocab, 1)
    if tn_full >= min(256, n_rows):
        # Whole vocab in one block (single reduction step).
        tile_v = vocab
        tile_n = max(8, min(1024, (tn_full // 8) * 8))
    else:
        # Tile the vocab reduction axis; keep rows dense on the sublane axis.
        tile_n = 256
        tile_v = max(128, min(vocab, (budget // tile_n // 128) * 128))
    if n_rows <= tile_n:
        tile_n = int(n_rows)
    return int(tile_n), int(tile_v)


@jax.jit
def chartedits_cross_entropy(logits, labels, diff_idx):
    """Pallas implementation of ChartEdits_CrossEntropy.forward.

    logits:   (B, S, V) float (f32 or bf16 — streamed as-is)
    labels:   (B, S)    int   (assumed in [0, V))
    diff_idx: (B, S)    any   (nonzero -> "change" token)
    returns scalar float32 loss.
    """
    B, S, V = logits.shape
    N = B * S
    itemsize = jnp.dtype(logits.dtype).itemsize

    lg = logits.reshape(N, V)                         # no dtype upcast, no pad
    meta = jnp.concatenate(
        [labels.reshape(N, 1).astype(jnp.int32),
         (diff_idx.reshape(N, 1) != 0).astype(jnp.int32)], axis=1)   # (N, 2)

    vmem_limit = _vmem_limit_bytes()
    tile_n, tile_v = _pick_tiles(N, V, itemsize, vmem_limit)
    n_i = pl.cdiv(N, tile_n)
    n_k = pl.cdiv(V, tile_v)
    mask_cols = bool(n_k * tile_v != V)

    kernel = functools.partial(_ce_partial_kernel, n_rows=N, vocab=V,
                               tile_n=tile_n, tile_v=tile_v,
                               mask_cols=mask_cols)

    cost = pl.CostEstimate(
        flops=5 * N * V,
        transcendentals=N * V,
        bytes_accessed=N * V * itemsize + N * 8 + n_i * 128 * 4,
    )

    partials = pl.pallas_call(
        kernel,
        out_shape=jax.ShapeDtypeStruct((n_i, 128), jnp.float32),
        grid_spec=pltpu.PrefetchScalarGridSpec(
            num_scalar_prefetch=0,
            grid=(n_i, n_k),
            in_specs=[pl.BlockSpec((tile_n, tile_v), lambda i, k: (i, k)),
                      pl.BlockSpec((tile_n, 2), lambda i, k: (i, 0))],
            out_specs=pl.BlockSpec((1, 128), lambda i, k: (i, 0)),
            scratch_shapes=[pltpu.VMEM((tile_n, 1), jnp.float32)] * 3,
        ),
        compiler_params=pltpu.CompilerParams(
            # Row tiles write distinct output blocks -> "parallel" (megacore
            # safe on v7x); the vocab reduction axis is innermost "arbitrary".
            dimension_semantics=("parallel", "arbitrary"),
            vmem_limit_bytes=vmem_limit),
        cost_estimate=cost,
    )(lg, meta)

    sums = jnp.sum(partials, axis=0)                  # tiny (128,) reduction
    s_change, s_all, c_change = sums[0], sums[1], sums[2]
    s_remain = s_all - s_change
    c_remain = jnp.float32(N) - c_change

    loss_change = s_change / c_change
    loss_remain = s_remain / c_remain
    harmonic = 2.0 / (1.0 / loss_change + 1.0 / loss_remain)
    mean_loss = s_all / N

    # Fallback: if either mask is empty, return plain mean (like the PyTorch code).
    return jnp.where((c_change == 0) | (c_remain == 0), mean_loss, harmonic)


def _reference(logits, labels, diff_idx):
    B, S, V = logits.shape
    lg = logits.reshape(-1, V).astype(jnp.float32)
    logp = jax.nn.log_softmax(lg, axis=-1)
    loss = -jnp.take_along_axis(logp, labels.reshape(-1, 1).astype(jnp.int32),
                                axis=-1)[:, 0]
    change = (diff_idx.reshape(-1) != 0).astype(jnp.float32)
    remain = 1.0 - change
    c_change, c_remain = change.sum(), remain.sum()
    loss_change = (loss * change).sum() / c_change
    loss_remain = (loss * remain).sum() / c_remain
    harmonic = 2.0 / (1.0 / loss_change + 1.0 / loss_remain)
    return jnp.where((c_change == 0) | (c_remain == 0), loss.mean(), harmonic)


if __name__ == "__main__":
    key = jax.random.PRNGKey(0)
    B, S, V = 2, 8, 256  # batch, sequence, vocab

    k1, k2, k3 = jax.random.split(key, 3)
    logits = jax.random.normal(k1, (B, S, V), dtype=jnp.float32)
    labels = jax.random.randint(k2, (B, S), 0, V, dtype=jnp.int32)
    diff_idx = jax.random.bernoulli(k3, 0.4, (B, S)).astype(jnp.int32)
    # make sure both "change" and "remain" tokens exist
    diff_idx = diff_idx.at[0, 0].set(1).at[0, 1].set(0)

    out = chartedits_cross_entropy(logits, labels, diff_idx)
    out = jax.block_until_ready(out)

    ref = jax.block_until_ready(_reference(logits, labels, diff_idx))
    np.testing.assert_allclose(np.asarray(out), np.asarray(ref),
                               rtol=1e-5, atol=1e-5)

    print("KERNEL_OK")
</pallas_src>

<mosaic_0001>
module attributes {stable_mosaic.version = 11 : i64} {
  func.func @_ce_partial_kernel(%arg0: i32, %arg1: i32, %arg2: memref<16x256xf32, #tpu.memory_space<vmem>>, %arg3: memref<16x2xi32, #tpu.memory_space<vmem>>, %arg4: memref<1x128xf32, #tpu.memory_space<vmem>>, %arg5: memref<16x1xf32, #tpu.memory_space<vmem>>, %arg6: memref<16x1xf32, #tpu.memory_space<vmem>>, %arg7: memref<16x1xf32, #tpu.memory_space<vmem>>) attributes {dimension_semantics = [#tpu.dimension_semantics<parallel>, #tpu.dimension_semantics<arbitrary>], iteration_bounds = array<i64: 1, 1>, scalar_prefetch = 0 : i64, scratch_operands = 3 : i64, tpu.core_type = #tpu.core_type<tc>, window_params = [{transform_indices = @transform_0, window_bounds = array<i64: 16, 256>}, {transform_indices = @transform_1, window_bounds = array<i64: 16, 2>}, {transform_indices = @transform_2, window_bounds = array<i64: 1, 128>}]} {
    %c0_i32 = arith.constant 0 : i32
    %0 = arith.cmpi eq, %arg1, %c0_i32 : i32
    %1 = arith.extui %0 : i1 to i32
    %c0_i32_0 = arith.constant 0 : i32
    %2 = arith.cmpi ne, %1, %c0_i32_0 : i32
    scf.if %2 {
      %cst_21 = arith.constant 0xFF800000 : f32
      %38 = vector.broadcast %cst_21 : f32 to vector<16x1xf32>
      %c0_22 = arith.constant 0 : index
      %c0_23 = arith.constant 0 : index
      %39 = vector.load %arg5[%c0_22, %c0_23] : memref<16x1xf32, #tpu.memory_space<vmem>>, vector<16x1xf32>
      tpu.vector_store %arg5[%c0_22, %c0_23], %38 {strides = array<i32>} : memref<16x1xf32, #tpu.memory_space<vmem>>, vector<16x1xf32>,
      %cst_24 = arith.constant 0.000000e+00 : f32
      %40 = vector.broadcast %cst_24 : f32 to vector<16x1xf32>
      %c0_25 = arith.constant 0 : index
      %c0_26 = arith.constant 0 : index
      %41 = vector.load %arg6[%c0_25, %c0_26] : memref<16x1xf32, #tpu.memory_space<vmem>>, vector<16x1xf32>
      tpu.vector_store %arg6[%c0_25, %c0_26], %40 {strides = array<i32>} : memref<16x1xf32, #tpu.memory_space<vmem>>, vector<16x1xf32>,
      %cst_27 = arith.constant 0.000000e+00 : f32
      %42 = vector.broadcast %cst_27 : f32 to vector<16x1xf32>
      %c0_28 = arith.constant 0 : index
      %c0_29 = arith.constant 0 : index
      %43 = vector.load %arg7[%c0_28, %c0_29] : memref<16x1xf32, #tpu.memory_space<vmem>>, vector<16x1xf32>
      tpu.vector_store %arg7[%c0_28, %c0_29], %42 {strides = array<i32>} : memref<16x1xf32, #tpu.memory_space<vmem>>, vector<16x1xf32>,
    } else {
    }
    %c0 = arith.constant 0 : index
    %c0_1 = arith.constant 0 : index
    %3 = vector.load %arg2[%c0, %c0_1] : memref<16x256xf32, #tpu.memory_space<vmem>>, vector<16x256xf32>
    %c0_2 = arith.constant 0 : index
    %c0_3 = arith.constant 0 : index
    %4 = vector.load %arg3[%c0_2, %c0_3] : memref<16x2xi32, #tpu.memory_space<vmem>>, vector<16x1xi32>
    %c256_i32 = arith.constant 256 : i32
    %5 = arith.muli %arg1, %c256_i32 : i32
    %6 = tpu.iota {dimensions = array<i32: 1>} : vector<1x256xi32>
    %7 = vector.broadcast %5 : i32 to vector<1x256xi32>
    %8 = arith.addi %7, %6 : vector<1x256xi32>
    %c0_4 = arith.constant 0 : index
    %c0_5 = arith.constant 0 : index
    %9 = vector.load %arg5[%c0_4, %c0_5] : memref<16x1xf32, #tpu.memory_space<vmem>>, vector<16x1xf32>
    %cst = arith.constant dense<0xFF800000> : vector<16xf32>
    %10 = vector.multi_reduction <maximumf>, %3, %cst [1] : vector<16x256xf32> to vector<16xf32>
    %11 = vector.shape_cast %10 : vector<16xf32> to vector<16x1xf32>
    %12 = arith.maximumf %9, %11 : vector<16x1xf32>
    %13 = vector.broadcast %12 : vector<16x1xf32> to vector<16x256xf32>
    %14 = arith.subf %3, %13 : vector<16x256xf32>
    %c0_6 = arith.constant 0 : index
    %c0_7 = arith.constant 0 : index
    %15 = vector.load %arg6[%c0_6, %c0_7] : memref<16x1xf32, #tpu.memory_space<vmem>>, vector<16x1xf32>
    %16 = arith.subf %9, %12 : vector<16x1xf32>
    %17 = math.exp %16 : vector<16x1xf32>
    %18 = arith.mulf %15, %17 : vector<16x1xf32>
    %19 = math.exp %14 : vector<16x256xf32>
    %cst_8 = arith.constant dense<0.000000e+00> : vector<16xf32>
    %20 = vector.multi_reduction <add>, %19, %cst_8 [1] : vector<16x256xf32> to vector<16xf32>
    %21 = vector.shape_cast %20 : vector<16xf32> to vector<16x1xf32>
    %22 = arith.addf %18, %21 : vector<16x1xf32>
    %c0_9 = arith.constant 0 : index
    %c0_10 = arith.constant 0 : index
    %23 = vector.load %arg6[%c0_9, %c0_10] : memref<16x1xf32, #tpu.memory_space<vmem>>, vector<16x1xf32>
    tpu.vector_store %arg6[%c0_9, %c0_10], %22 {strides = array<i32>} : memref<16x1xf32, #tpu.memory_space<vmem>>, vector<16x1xf32>,
    %c0_11 = arith.constant 0 : index
    %c0_12 = arith.constant 0 : index
    %24 = vector.load %arg7[%c0_11, %c0_12] : memref<16x1xf32, #tpu.memory_space<vmem>>, vector<16x1xf32>
    %25 = vector.broadcast %8 : vector<1x256xi32> to vector<16x256xi32>
    %26 = vector.broadcast %4 : vector<16x1xi32> to vector<16x256xi32>
    %27 = arith.cmpi eq, %25, %26 : vector<16x256xi32>
    %cst_13 = arith.constant 0.000000e+00 : f32
    %28 = vector.broadcast %cst_13 : f32 to vector<16x256xf32>
    %29 = arith.select %27, %3, %28 : vector<16x256xi1>, vector<16x256xf32>
    %cst_14 = arith.constant dense<0.000000e+00> : vector<16xf32>
    %30 = vector.multi_reduction <add>, %29, %cst_14 [1] : vector<16x256xf32> to vector<16xf32>
    %31 = vector.shape_cast %30 : vector<16xf32> to vector<16x1xf32>
    %32 = arith.addf %24, %31 : vector<16x1xf32>
    %c0_15 = arith.constant 0 : index
    %c0_16 = arith.constant 0 : index
    %33 = vector.load %arg7[%c0_15, %c0_16] : memref<16x1xf32, #tpu.memory_space<vmem>>, vector<16x1xf32>
    tpu.vector_store %arg7[%c0_15, %c0_16], %32 {strides = array<i32>} : memref<16x1xf32, #tpu.memory_space<vmem>>, vector<16x1xf32>,
    %c0_17 = arith.constant 0 : index
    %c0_18 = arith.constant 0 : index
    %34 = vector.load %arg5[%c0_17, %c0_18] : memref<16x1xf32, #tpu.memory_space<vmem>>, vector<16x1xf32>
    tpu.vector_store %arg5[%c0_17, %c0_18], %12 {strides = array<i32>} : memref<16x1xf32, #tpu.memory_space<vmem>>, vector<16x1xf32>,
    %c0_i32_19 = arith.constant 0 : i32
    %35 = arith.cmpi eq, %arg1, %c0_i32_19 : i32
    %36 = arith.extui %35 : i1 to i32
    %c0_i32_20 = arith.constant 0 : i32
    %37 = arith.cmpi ne, %36, %c0_i32_20 : i32
    scf.if %37 {
      %c16_i32 = arith.constant 16 : i32
      %38 = arith.muli %arg0, %c16_i32 : i32
      %39 = tpu.iota {dimensions = array<i32: 0>} : vector<16x1xi32>
      %40 = vector.broadcast %38 : i32 to vector<16x1xi32>
      %41 = arith.addi %40, %39 : vector<16x1xi32>
      %c16_i32_21 = arith.constant 16 : i32
      %42 = vector.broadcast %c16_i32_21 : i32 to vector<16x1xi32>
      %43 = arith.cmpi slt, %41, %42 : vector<16x1xi32>
      %c0_22 = arith.constant 0 : index
      %c0_23 = arith.constant 0 : index
      %44 = vector.load %arg5[%c0_22, %c0_23] : memref<16x1xf32, #tpu.memory_space<vmem>>, vector<16x1xf32>
      %c0_24 = arith.constant 0 : index
      %c0_25 = arith.constant 0 : index
      %45 = vector.load %arg6[%c0_24, %c0_25] : memref<16x1xf32, #tpu.memory_space<vmem>>, vector<16x1xf32>
      %46 = math.log %45 : vector<16x1xf32>
      %47 = arith.addf %44, %46 : vector<16x1xf32>
      %c0_26 = arith.constant 0 : index
      %c0_27 = arith.constant 0 : index
      %48 = vector.load %arg7[%c0_26, %c0_27] : memref<16x1xf32, #tpu.memory_space<vmem>>, vector<16x1xf32>
      %49 = arith.subf %47, %48 : vector<16x1xf32>
      %cst_28 = arith.constant 0.000000e+00 : f32
      %50 = vector.broadcast %cst_28 : f32 to vector<16x1xf32>
      %51 = arith.select %43, %49, %50 : vector<16x1xi1>, vector<16x1xf32>
      %c0_29 = arith.constant 0 : index
      %c1 = arith.constant 1 : index
      %52 = vector.load %arg3[%c0_29, %c1] : memref<16x2xi32, #tpu.memory_space<vmem>>, vector<16x1xi32>
      %53 = arith.sitofp %52 : vector<16x1xi32> to vector<16x1xf32>
      %cst_30 = arith.constant 0.000000e+00 : f32
      %54 = vector.broadcast %cst_30 : f32 to vector<16x1xf32>
      %55 = arith.select %43, %53, %54 : vector<16x1xi1>, vector<16x1xf32>
      %56 = arith.mulf %51, %55 : vector<16x1xf32>
      %57 = vector.shape_cast %56 : vector<16x1xf32> to vector<1x16x1xf32>
      %cst_31 = arith.constant dense<0.000000e+00> : vector<1xf32>
      %58 = vector.multi_reduction <add>, %57, %cst_31 [1, 2] : vector<1x16x1xf32> to vector<1xf32>
      %59 = vector.shape_cast %58 : vector<1xf32> to vector<1x1x1xf32>
      %60 = vector.extract %59[0, 0, 0] : f32 from vector<1x1x1xf32>
      %61 = vector.shape_cast %51 : vector<16x1xf32> to vector<1x16x1xf32>
      %cst_32 = arith.constant dense<0.000000e+00> : vector<1xf32>
      %62 = vector.multi_reduction <add>, %61, %cst_32 [1, 2] : vector<1x16x1xf32> to vector<1xf32>
      %63 = vector.shape_cast %62 : vector<1xf32> to vector<1x1x1xf32>
      %64 = vector.extract %63[0, 0, 0] : f32 from vector<1x1x1xf32>
      %65 = vector.shape_cast %55 : vector<16x1xf32> to vector<1x16x1xf32>
      %cst_33 = arith.constant dense<0.000000e+00> : vector<1xf32>
      %66 = vector.multi_reduction <add>, %65, %cst_33 [1, 2] : vector<1x16x1xf32> to vector<1xf32>
      %67 = vector.shape_cast %66 : vector<1xf32> to vector<1x1x1xf32>
      %68 = vector.extract %67[0, 0, 0] : f32 from vector<1x1x1xf32>
      %69 = tpu.iota {dimensions = array<i32: 1>} : vector<1x128xi32>
      %c0_i32_34 = arith.constant 0 : i32
      %70 = vector.broadcast %c0_i32_34 : i32 to vector<1x128xi32>
      %71 = arith.cmpi eq, %69, %70 : vector<1x128xi32>
      %cst_35 = arith.constant 0.000000e+00 : f32
      %72 = vector.broadcast %60 : f32 to vector<1x128xf32>
      %73 = vector.broadcast %cst_35 : f32 to vector<1x128xf32>
      %74 = arith.select %71, %72, %73 : vector<1x128xi1>, vector<1x128xf32>
      %c1_i32 = arith.constant 1 : i32
      %75 = vector.broadcast %c1_i32 : i32 to vector<1x128xi32>
      %76 = arith.cmpi eq, %69, %75 : vector<1x128xi32>
      %cst_36 = arith.constant 0.000000e+00 : f32
      %77 = vector.broadcast %64 : f32 to vector<1x128xf32>
      %78 = vector.broadcast %cst_36 : f32 to vector<1x128xf32>
      %79 = arith.select %76, %77, %78 : vector<1x128xi1>, vector<1x128xf32>
      %80 = arith.addf %74, %79 : vector<1x128xf32>
      %c2_i32 = arith.constant 2 : i32
      %81 = vector.broadcast %c2_i32 : i32 to vector<1x128xi32>
      %82 = arith.cmpi eq, %69, %81 : vector<1x128xi32>
      %cst_37 = arith.constant 0.000000e+00 : f32
      %83 = vector.broadcast %68 : f32 to vector<1x128xf32>
      %84 = vector.broadcast %cst_37 : f32 to vector<1x128xf32>
      %85 = arith.select %82, %83, %84 : vector<1x128xi1>, vector<1x128xf32>
      %86 = arith.addf %80, %85 : vector<1x128xf32>
      %c0_38 = arith.constant 0 : index
      %c0_39 = arith.constant 0 : index
      %87 = vector.load %arg4[%c0_38, %c0_39] : memref<1x128xf32, #tpu.memory_space<vmem>>, vector<1x128xf32>
      tpu.vector_store %arg4[%c0_38, %c0_39], %86 {strides = array<i32>} : memref<1x128xf32, #tpu.memory_space<vmem>>, vector<1x128xf32>,
    } else {
    }
    return
  }
  func.func @transform_0(%arg0: i32, %arg1: i32) -> (i32, i32) {
    %c0_i32 = arith.constant 0 : i32
    return %arg0, %arg1 : i32, i32
  }
  func.func @transform_1(%arg0: i32, %arg1: i32) -> (i32, i32) {
    %c0_i32 = arith.constant 0 : i32
    %c0_i32_0 = arith.constant 0 : i32
    return %arg0, %c0_i32 : i32, i32
  }
  func.func @transform_2(%arg0: i32, %arg1: i32) -> (i32, i32) {
    %c0_i32 = arith.constant 0 : i32
    %c0_i32_0 = arith.constant 0 : i32
    return %arg0, %c0_i32 : i32, i32
  }
}

</mosaic_0001>

<bundles_post_ra>
// kernel: chartedits_cross_entropy.1
= control target key start
LH: loop header
LB: loop body
LE: loop exit
PB: predicated region body
PF: predicated region fallthrough
CT: control target
= control target key end

     0   :  { %vm15_vm0 = vcmask 7168   ;;  %v240_v3 = vmov -inf   ;;  %v241_v7 = vmov 0   ;;  %v242_v9 = vmov 0.0   ;;  %s320_s0 = inlined_call_operand.vmem [shape: f32[16,256], index: 0, kind: input, shape index: {}]   ;;  %s321_s1 = inlined_call_operand.vmem [shape: s32[16,2], index: 1, kind: input, shape index: {}]   ;;  %s322_s2 = inlined_call_operand.vmem [shape: f32[1,128], index: 2, kind: output, shape index: {}]  }
   0x1   :  { %v22_v0 = vld [vmem:[%s320_s0] sm:$0xff]  ;;  %v23_v1 = vld [vmem:[%s320_s0 + $0x8] sm:$0xff]  ;;  %v268_v2 = vld [vmem:[%s320_s0 + $0x10] sm:$0xff]  ;;  %16 = vst.msk [vmem:[#allocation2] sm:$0xff] %vm15_vm0, %v240_v3  ;;  %222 = vset.pattern.permute.xlu1 %v241_v7  ;;  %223 = vset.pattern.permute.xlu0 %v241_v7  ;;  %v29_v19 = vlaneseq }
   0x2   :  { %17 = vst.msk [vmem:[#allocation2 + $0x8] sm:$0xff] %vm15_vm0, %v240_v3  ;;  %v37_v4 = vmax.f32 %v22_v0, %v23_v1  ;;  %v275_v5 = vld [vmem:[%s320_s0 + $0x18] sm:$0xff]  ;;  %v282_v8 = vld [vmem:[%s321_s1] sm:$0xff]  ;;  %18 = vst.msk [vmem:[#allocation3] sm:$0xff] %vm15_vm0, %v242_v9 }
   0x3   :  { %v40_v6 = vmax.f32 %v268_v2, %v275_v5  ;;  %19 = vst.msk [vmem:[#allocation3 + $0x8] sm:$0xff] %vm15_vm0, %v242_v9  ;;  %20 = vst.msk [vmem:[#allocation4] sm:$0xff] %vm15_vm0, %v242_v9  ;;  %v27_v18 = vld [vmem:[%s321_s1 + $0x8] sm:$0xff]  ;;  %v294_v20 = vand.u32 127, %v29_v19  ;;  %v146_v47 = vcvt.s32.f32 %v282_v8  ;;  %s243_s1 = smov 127  }
   0x4   :  { %38 = vmax.xlane.f32.xlu0 %v37_v4  ;;  %21 = vst.msk [vmem:[#allocation4 + $0x8] sm:$0xff] %vm15_vm0, %v242_v9  ;;  %v147_v50 = vcvt.s32.f32 %v27_v18 }
   0x5   :  { %v31_v21 = vadd.s32 128, %v294_v20  ;;  %vm196_vm5 = vcmp.eq.s32.totalorder %v294_v20, 0  ;;  %vm199_vm6 = vcmp.eq.s32.totalorder %v294_v20, 1  ;;  %vm203_vm7 = vcmp.eq.s32.totalorder %v294_v20, 2 }
   0x8   :  { %41 = vmax.xlane.f32.xlu0 %v40_v6  ;;  %v35_v10 = vld [vmem:[#allocation2] sm:$0xff] }
   0x9   :  { %v36_v13 = vld [vmem:[#allocation2 + $0x8] sm:$0xff]  ;;  %v59_v54 = vld [vmem:[#allocation3] sm:$0xff] }
   0xa   :  { %v88_v46 = vld [vmem:[#allocation4] sm:$0xff]  ;;  %v60_v58 = vld [vmem:[#allocation3 + $0x8] sm:$0xff] }
   0xb   :  { %v89_v63 = vld [vmem:[#allocation4 + $0x8] sm:$0xff] }
  0x1e   :  { %91 = vperm.xlu0 %223, %v282_v8  }
  0x8d   :  { %v39_v11 = vpop.xlane.xlu0 %38 }
  0x8e   :  { %v43_v12 = vmax.f32 %v35_v10, %v39_v11 }
  0x90   :  { %v61_v14 = vsub.f32 %v35_v10, %v43_v12  ;;  %114 = vst.msk [vmem:[#allocation2] sm:$0xff] %vm15_vm0, %v43_v12  ;;  %47 = vperm.xlu1 %222, %v43_v12  }
  0x91   :  { %v42_v15 = vpop.xlane.xlu0 %41 }
  0x92   :  { %v44_v16 = vmax.f32 %v36_v13, %v42_v15  ;;  %v63_v51 = vmul.f32 1.442695, %v61_v14 }
  0x94   :  { %v62_v17 = vsub.f32 %v36_v13, %v44_v16  ;;  %115 = vst.msk [vmem:[#allocation2 + $0x8] sm:$0xff] %vm15_vm0, %v44_v16  ;;  %52 = vperm.xlu1 %222, %v44_v16  }
  0x96   :  { %v65_v52 = vmul.f32 1.442695, %v62_v17 }
  0x97   :  { %v128_v6 = vld [vmem:[#allocation2] sm:$0xff] }
  0x98   :  { %94 = vperm.xlu1 %222, %v27_v18  }
  0x99   :  { %v92_v22 = vpop.permute.xlu0 %91 }
  0x9a   :  { %vm96_vm1 = vcmp.eq.s32.totalorder %v294_v20, %v92_v22  ;;  %vm97_vm2 = vcmp.eq.s32.totalorder %v31_v21, %v92_v22 }
  0x9b   :  { %v100_v23 = vsel %vm96_vm1, %v22_v0, 0.0  ;;  %v101_v24 = vsel %vm97_vm2, %v23_v1, 0.0  ;;  %v129_v13 = vld [vmem:[#allocation2 + $0x8] sm:$0xff] }
  0x9c   :  { %v104_v25 = vadd.f32 %v101_v24, %v100_v23 }
  0x9e   :  { %105 = vadd.xlane.f32.xlu0 %v104_v25 }
 0x10b   :  { %v48_v26 = vpop.permute.xlu1 %47 }
 0x10c   :  { %v55_v27 = vsub.f32 %v22_v0, %v48_v26  ;;  %v56_v28 = vsub.f32 %v23_v1, %v48_v26 }
 0x10e   :  { %v69_v29 = vmul.f32 1.442695, %v55_v27  ;;  %v71_v30 = vmul.f32 1.442695, %v56_v28 }
 0x10f   :  { %v53_v31 = vpop.permute.xlu1 %52 }
 0x110   :  { %224 = vpow2.f32 %v69_v29  ;;  %v57_v32 = vsub.f32 %v268_v2, %v53_v31  ;;  %v58_v33 = vsub.f32 %v275_v5, %v53_v31 }
 0x111   :  { %226 = vpow2.f32 %v71_v30 }
 0x112   :  { %v73_v34 = vmul.f32 1.442695, %v57_v32  ;;  %v75_v35 = vmul.f32 1.442695, %v58_v33 }
 0x113   :  { %v95_v38 = vpop.permute.xlu1 %94 }
 0x114   :  { %228 = vpow2.f32 %v73_v34  ;;  %vm98_vm3 = vcmp.eq.s32.totalorder %v294_v20, %v95_v38  ;;  %vm99_vm4 = vcmp.eq.s32.totalorder %v31_v21, %v95_v38 }
 0x115   :  { %230 = vpow2.f32 %v75_v35  ;;  %v102_v43 = vsel %vm98_vm3, %v268_v2, 0.0  ;;  %v103_v44 = vsel %vm99_vm4, %v275_v5, 0.0 }
 0x116   :  { %v107_v45 = vadd.f32 %v103_v44, %v102_v43  ;;  %232 = vpow2.f32 %v63_v51 }
 0x117   :  { %234 = vpow2.f32 %v65_v52 }
 0x11d   :  { %v225_v36 = vpop.eup %224 }
 0x11e   :  { %v227_v37 = vpop.eup %226 }
 0x11f   :  { %v77_v39 = vadd.f32 %v227_v37, %v225_v36 }
 0x121   :  { %v229_v40 = vpop.eup %228  ;;  %78 = vadd.xlane.f32.xlu1 %v77_v39 }
 0x122   :  { %v231_v41 = vpop.eup %230 }
 0x123   :  { %v80_v42 = vadd.f32 %v231_v41, %v229_v40  ;;  %v233_v53 = vpop.eup %232 }
 0x124   :  { %v67_v55 = vmul.f32 %v233_v53, %v59_v54  ;;  %v235_v56 = vpop.eup %234 }
 0x125   :  { %81 = vadd.xlane.f32.xlu1 %v80_v42  ;;  %v68_v60 = vmul.f32 %v235_v56, %v60_v58 }
 0x127   :  { %v106_v48 = vpop.xlane.xlu0 %105 }
 0x128   :  { %v110_v49 = vadd.f32 %v106_v48, %v88_v46 }
 0x129   :  { %108 = vadd.xlane.f32.xlu1 %v107_v45 }
 0x12a   :  { %112 = vst.msk [vmem:[#allocation4] sm:$0xff] %vm15_vm0, %v110_v49 }
 0x131   :  { %v138_v7 = vld [vmem:[#allocation4] sm:$0xff] }
 0x13a   :  { %152 = vrot.lane.b32.xlu1 %v146_v47, %s243_s1 }
 0x13e   :  { %154 = vrot.lane.b32.xlu1 %v147_v50, %s243_s1 }
 0x1aa   :  { %v79_v57 = vpop.xlane.xlu1 %78 }
 0x1ab   :  { %v83_v59 = vadd.f32 %v79_v57, %v67_v55 }
 0x1ad   :  { %86 = vst.msk [vmem:[#allocation3] sm:$0xff] %vm15_vm0, %v83_v59 }
 0x1ae   :  { %v82_v61 = vpop.xlane.xlu1 %81 }
 0x1af   :  { %v84_v62 = vadd.f32 %v82_v61, %v68_v60 }
 0x1b1   :  { %87 = vst.msk [vmem:[#allocation3 + $0x8] sm:$0xff] %vm15_vm0, %v84_v62 }
 0x1b2   :  { %v109_v0 = vpop.xlane.xlu1 %108 }
 0x1b3   :  { %v111_v1 = vadd.f32 %v109_v0, %v89_v63 }
 0x1b4   :  { %v130_v2 = vld [vmem:[#allocation3] sm:$0xff] }
 0x1b5   :  { %113 = vst.msk [vmem:[#allocation4 + $0x8] sm:$0xff] %vm15_vm0, %v111_v1  ;;  %236 = vlog2.f32 %v130_v2 }
 0x1b6   :  { %v153_v10 = vpop.permute.xlu1 %152 }
 0x1b7   :  { %v184_v24 = vsel %vm15_vm0, %v153_v10, 0.0 }
 0x1b8   :  { %v131_v3 = vld [vmem:[#allocation3 + $0x8] sm:$0xff] }
 0x1b9   :  { %238 = vlog2.f32 %v131_v3 }
 0x1ba   :  { %v155_v18 = vpop.permute.xlu1 %154 }
 0x1bb   :  { %v185_v25 = vsel %vm15_vm0, %v155_v18, 0.0 }
 0x1bc   :  { %v139_v15 = vld [vmem:[#allocation4 + $0x8] sm:$0xff]  ;;  %v186_v29 = vadd.f32 %v185_v25, %v184_v24 }
 0x1c2   :  { %v237_v4 = vpop.eup %236 }
 0x1c3   :  { %v133_v5 = vmul.f32 0.6931472, %v237_v4 }
 0x1c5   :  { %v136_v8 = vadd.f32 %v133_v5, %v128_v6 }
 0x1c6   :  { %v239_v9 = vpop.eup %238 }
 0x1c7   :  { %v140_v11 = vsub.f32 %v136_v8, %v138_v7  ;;  %v135_v12 = vmul.f32 0.6931472, %v239_v9 }
 0x1c9   :  { %v137_v14 = vadd.f32 %v135_v12, %v129_v13  ;;  %v158_v16 = vmul.f32 %v153_v10, %v140_v11  ;;  %v172_v21 = vsel %vm15_vm0, %v140_v11, 0.0 }
 0x1cb   :  { %v141_v17 = vsub.f32 %v137_v14, %v139_v15  ;;  %v160_v26 = vsel %vm15_vm0, %v158_v16, 0.0 }
 0x1cd   :  { %v159_v19 = vmul.f32 %v155_v18, %v141_v17  ;;  %v173_v22 = vsel %vm15_vm0, %v141_v17, 0.0 }
 0x1ce   :  { %v174_v23 = vadd.f32 %v173_v22, %v172_v21 }
 0x1cf   :  { %v161_v27 = vsel %vm15_vm0, %v159_v19, 0.0 }
 0x1d0   :  { %175 = vadd.xlane.f32.xlu0 %v174_v23  ;;  %v162_v28 = vadd.f32 %v161_v27, %v160_v26 }
 0x1d2   :  { %163 = vadd.xlane.f32.xlu1 %v162_v28 }
 0x1d4   :  { %187 = vadd.xlane.f32.xlu0 %v186_v29 }
 0x259   :  { %v176_v30 = vpop.xlane.xlu0 %175 }
 0x25a   :  { %v177_v31 = vrot.slane %v176_v30, 4 }
 0x25b   :  { %v164_v32 = vpop.xlane.xlu1 %163 }
 0x25c   :  { %v178_v33 = vadd.f32 %v177_v31, %v176_v30  ;;  %v165_v34 = vrot.slane %v164_v32, 4 }
 0x25d   :  { %v188_v35 = vpop.xlane.xlu0 %187 }
 0x25e   :  { %v179_v36 = vrot.slane %v178_v33, 2  ;;  %v166_v37 = vadd.f32 %v165_v34, %v164_v32  ;;  %v189_v38 = vrot.slane %v188_v35, 4 }
 0x260   :  { %v167_v39 = vrot.slane %v166_v37, 2  ;;  %v190_v40 = vadd.f32 %v189_v38, %v188_v35  ;;  %v180_v41 = vadd.f32 %v179_v36, %v178_v33 }
 0x262   :  { %v191_v42 = vrot.slane %v190_v40, 2  ;;  %v168_v43 = vadd.f32 %v167_v39, %v166_v37  ;;  %v181_v44 = vrot.slane %v180_v41, 1 }
 0x264   :  { %v192_v45 = vadd.f32 %v191_v42, %v190_v40  ;;  %v169_v46 = vrot.slane %v168_v43, 1  ;;  %v182_v49 = vadd.f32 %v181_v44, %v180_v41 }
 0x266   :  { %v170_v47 = vadd.f32 %v169_v46, %v168_v43  ;;  %v193_v48 = vrot.slane %v192_v45, 1 }
 0x268   :  { %212 = vpush %v170_v47  ;;  %v194_v50 = vadd.f32 %v193_v48, %v192_v45 }
 0x269   :  { %214 = vpush %v182_v49 }
 0x26a   :  { %216 = vpush %v194_v50 }
 0x299   :  { %s213_s20 = spop %212 }
 0x29a   :  { %v197_v51 = vstv %s213_s20  ;;  %s215_s21 = spop %214 }
 0x29b   :  { %v198_v52 = vsel %vm196_vm5, %v197_v51, 0.0  ;;  %v200_v53 = vstv %s215_s21  ;;  %s217_s22 = spop %216 }
 0x29c   :  { %v201_v54 = vsel %vm199_vm6, %v200_v53, 0.0  ;;  %v204_v55 = vstv %s217_s22 }
 0x29d   :  { %v202_v56 = vadd.f32 %v201_v54, %v198_v52  ;;  %v205_v57 = vsel %vm203_vm7, %v204_v55, 0.0 }
 0x29f   :  { %v206_v58 = vadd.f32 %v205_v57, %v202_v56 }
 0x2a1   :  { %207 = vst [vmem:[%s322_s2] sm:$0x1] %v206_v58 }

</bundles_post_ra>
